<compile_context>
chip_gen: v5e
topology: v5e:2x2
jax: 0.10.0
libtpu: 0.0.40
codegen_flags: <defaults>
</compile_context>

<pallas_src>
import functools

import jax
import jax.numpy as jnp
from jax.experimental import pallas as pl
from jax.experimental.pallas import tpu as pltpu

NEG_FILL = -1.0e9  # matches masked_fill(~mask, -1000000000.0)


def _round_up(x, m):
    return ((x + m - 1) // m) * m


def _vmem_capacity_bytes():
    """Generation-aware VMEM capacity; conservative fallback (v7x per-TC)."""
    try:
        cap = getattr(pltpu.get_tpu_info(), "vmem_capacity_bytes", None)
        if cap:
            return int(cap)
    except Exception:
        pass
    return 64 * 1024 * 1024


def _choose_tiling(B, E, Demb, Dar):
    """Pick the largest multiple-of-16 batch tile whose tile-PADDED,
    double-buffered footprint (plus in-kernel temporaries) fits the budget."""
    cap = _vmem_capacity_bytes()
    budget = int(cap * 0.55)

    def per_tile_bytes(bt):
        # bf16 blocks pad last-2 dims to (16,128); f32/int32 to (8,128).
        ent = 2 * bt * _round_up(E, 16) * _round_up(Demb, 128) * 2       # dbl-buffered
        ar = 2 * _round_up(bt, 16) * _round_up(Dar, 128) * 2
        maskg = 2 * 2 * _round_up(bt, 8) * _round_up(E, 128) * 4          # mask + gumbel
        outs = 2 * 2 * _round_up(bt, 8) * 128 * 4                          # two slabs
        temps = bt * _round_up(E, 16) * _round_up(Demb, 128) * 2           # bf16 product
        temps += 4 * _round_up(bt, 8) * _round_up(E, 128) * 4              # z/exp/pert/...
        return ent + ar + maskg + outs + temps + (2 << 20)                 # weights+slack

    B16 = _round_up(B, 16)
    bt = 16
    while bt < min(B16, 4096) and per_tile_bytes(bt * 2) <= budget:
        bt *= 2
    bt = min(bt, B16)
    # Guarantee >=2 grid tiles when possible so the "parallel" batch axis
    # actually splits across v7x's two TensorCores (no-op on v5e/v6e).
    if B16 >= 32:
        bt = min(bt, _round_up((B16 + 1) // 2, 16))
    bt = max(16, bt)
    B_pad = _round_up(B, bt)
    vmem_limit = int(min(cap * 0.6,
                         max(16 << 20, per_tile_bytes(bt) + (8 << 20))))
    return bt, B_pad, vmem_limit


def generate_target_mask(level1_action, entity_size):
    """Host-side stand-in for mask_func.generate_target_mask -> bool [B, E].

    # TODO(synk): mask_func.generate_target_mask is external to the module
    # spec; placeholder rule: odd level1 actions may target any entity, even
    # ones target nothing.  Swap in the real function without kernel changes.
    """
    valid_row = (level1_action.reshape(-1, 1).astype(jnp.int32) & 1) == 1
    return jnp.broadcast_to(valid_row, (level1_action.shape[0], entity_size))


def fuse_params(raw, param_dtype=jnp.bfloat16):
    """Host-side one-time parameter fusion.

    fc_2(fc_1(x)) is purely linear and the k=1 Conv1d key is folded into the
    query, so the whole query/key projection collapses into a single matrix:
        vext = ar @ wfull + bfull,   wfull: [Dar, Demb+1],  bfull: [Demb+1]
    where vext[:, :Demb] = wc^T query and vext[:, Demb] = bc . query.
    """
    wc = raw['wc'].astype(jnp.float32)    # [64, Demb]  (Conv1d k=1 weight, squeezed)
    bc = raw['bc'].astype(jnp.float32)    # [64]
    w1 = raw['w1'].astype(jnp.float32)    # [256, Dar]
    b1 = raw['b1'].astype(jnp.float32)    # [256]
    w2 = raw['w2'].astype(jnp.float32)    # [64, 256]
    b2 = raw['b2'].astype(jnp.float32)    # [64]

    wcb = jnp.concatenate([wc, bc[:, None]], axis=1)   # [64, Demb+1]
    w12 = w2 @ w1                                      # [64, Dar]
    b12 = w2 @ b1 + b2                                 # [64]
    wfull = w12.T @ wcb                                # [Dar, Demb+1]
    bfull = b12 @ wcb                                  # [Demb+1]
    return {
        'wfull': wfull.astype(param_dtype),            # MXU operand -> bf16
        'bfull': bfull[None, :].astype(jnp.float32),   # added post-matmul in f32
    }


def _selected_target_kernel(inv_temperature,
                            ent_ref, ar_ref, mask_ref, g_ref,
                            wfull_ref, bfull_ref,
                            logp_ref, idx_ref):
    ent = ent_ref[...]                    # [bt, E, Demb]  bf16
    ar = ar_ref[...]                      # [bt, Dar]      bf16
    mask = mask_ref[...]                  # [bt, E]        int32 (0/1)
    g = g_ref[...]                        # [bt, E]        f32   Gumbel(0,1)
    wfull = wfull_ref[...]                # [Dar, Demb+1]  bf16
    bfull = bfull_ref[...]                # [1, Demb+1]    f32

    bt, E, Demb = ent.shape

    # Fully fused projection: one tiny MXU matmul per tile (f32 accumulate).
    vext = jax.lax.dot_general(
        ar, wfull, (((1,), (0,)), ((), ())),
        preferred_element_type=jnp.float32) + bfull                     # [bt, Demb+1]
    v = vext[:, :Demb]                                                  # [bt, Demb]
    t = vext[:, Demb:]                                                  # [bt, 1]

    # y[b,e] = ent[b,e,:] . v[b,:] + bc.query[b]
    # bf16 multiply (2x VALU density on v6e/v7x), f32 accumulation.
    # TODO(synk): an upstream [B, Demb, E] entity layout would make this reduce
    # lane-dense for Demb < 128; kept [B, E, Demb] to avoid re-streaming ent
    # through HBM for a transpose.
    prod = ent * v.astype(ent.dtype)[:, None, :]                        # [bt, E, Demb]
    y = jnp.sum(prod, axis=-1, dtype=jnp.float32) + t                   # [bt, E] f32

    # mask + temperature (multiply by precomputed 1/T), all in f32.
    valid = mask > 0
    logits = jnp.where(valid, y, NEG_FILL) * inv_temperature            # [bt, E]

    # softmax pieces (Categorical(probs=softmax(logits)).log_prob == log_softmax)
    m = jnp.max(logits, axis=-1, keepdims=True)
    z = logits - m
    lse = jnp.log(jnp.sum(jnp.exp(z), axis=-1, keepdims=True))          # [bt, 1]

    # Gumbel-max sample; argmax(z + g) == argmax(log_softmax + g).
    perturbed = z + g
    pmax = jnp.max(perturbed, axis=-1, keepdims=True)
    iota = jax.lax.broadcasted_iota(jnp.int32, (bt, E), 1)
    idx = jnp.min(jnp.where(perturbed >= pmax, iota, E),
                  axis=-1, keepdims=True)                               # [bt, 1]

    # Tie-safe log-prob of the reported index (exact index select).
    sel = iota == idx
    sel_logp = jnp.max(jnp.where(sel, z, -jnp.inf),
                       axis=-1, keepdims=True) - lse                    # [bt, 1]

    # Reference ordering: log_prob of the sample first, THEN rows with no valid
    # target get their reported index forced to entity_size - 1.
    has_target = jnp.max(mask, axis=-1, keepdims=True) > 0              # [bt, 1]
    target_jet = jnp.where(has_target, idx, E - 1)                      # [bt, 1]

    # Lane-dense 128-wide slabs -> unmasked stores, one writeback DMA each.
    lane = jax.lax.broadcasted_iota(jnp.int32, (bt, 128), 1)
    logp_ref[...] = jnp.where(lane == 0, sel_logp, 0.0)
    idx_ref[...] = jnp.where(lane == 0, target_jet, 0)


def selected_target_head(autoregressive_embedding, level1_action,
                         entity_embeddings, params, rng_key,
                         temperature=0.8, target_mask=None):
    B, E, Demb = entity_embeddings.shape
    Dar = autoregressive_embedding.shape[-1]
    wfull, bfull = params['wfull'], params['bfull']

    if target_mask is None:
        target_mask = generate_target_mask(level1_action, E)
    mask_i32 = target_mask.astype(jnp.int32)                    # [B, E]
    gumbel = jax.random.gumbel(rng_key, (B, E), dtype=jnp.float32)

    b_tile, B_pad, vmem_limit = _choose_tiling(B, E, Demb, Dar)
    num_tiles = B_pad // b_tile

    def pad_b(x):
        if x.shape[0] == B_pad:
            return x
        pad = [(0, B_pad - x.shape[0])] + [(0, 0)] * (x.ndim - 1)
        return jnp.pad(x, pad)

    ent = pad_b(entity_embeddings)
    ar = pad_b(autoregressive_embedding.astype(wfull.dtype))
    mask_p = pad_b(mask_i32)
    gumbel_p = pad_b(gumbel)

    kernel = functools.partial(_selected_target_kernel, float(1.0 / temperature))

    logp_slab, idx_slab = pl.pallas_call(
        kernel,
        out_shape=(jax.ShapeDtypeStruct((B_pad, 128), jnp.float32),
                   jax.ShapeDtypeStruct((B_pad, 128), jnp.int32)),
        grid=(num_tiles,),
        in_specs=[
            pl.BlockSpec((b_tile, E, Demb), lambda i: (i, 0, 0)),
            pl.BlockSpec((b_tile, Dar), lambda i: (i, 0)),
            pl.BlockSpec((b_tile, E), lambda i: (i, 0)),
            pl.BlockSpec((b_tile, E), lambda i: (i, 0)),
            pl.BlockSpec(wfull.shape, lambda i: (0, 0)),   # weights: resident full blocks
            pl.BlockSpec(bfull.shape, lambda i: (0, 0)),
        ],
        out_specs=(pl.BlockSpec((b_tile, 128), lambda i: (i, 0)),
                   pl.BlockSpec((b_tile, 128), lambda i: (i, 0))),
        compiler_params=pltpu.CompilerParams(
            dimension_semantics=("parallel",),
            vmem_limit_bytes=vmem_limit),
    )(ent, ar, mask_p, gumbel_p, wfull, bfull)

    target_probs = logp_slab[:B, 0:1]        # [B, 1] f32
    target_jet = idx_slab[:B, 0:1]           # [B, 1] int32
    return target_probs, target_jet


if __name__ == "__main__":
    key0 = jax.random.PRNGKey(0)
    B, E = 2, 8
    embedding_size = 32
    autoregressive_embedding_size = 32
    original_256, original_64 = 256, 64
    temperature = 0.8

    ks = jax.random.split(key0, 6)
    entity_embeddings = jax.random.normal(
        ks[0], (B, E, embedding_size), jnp.float32).astype(jnp.bfloat16)
    autoregressive_embedding = jax.random.normal(
        ks[1], (B, autoregressive_embedding_size), jnp.float32).astype(jnp.bfloat16)
    level1_action = jnp.array([1, 2], dtype=jnp.int32)  # row 0: has target, row 1: none

    raw_params = {
        'wc': 0.05 * jax.random.normal(ks[2], (original_64, embedding_size), jnp.float32),
        'bc': jnp.zeros((original_64,), jnp.float32),
        'w1': 0.05 * jax.random.normal(ks[3], (original_256, autoregressive_embedding_size), jnp.float32),
        'b1': jnp.zeros((original_256,), jnp.float32),
        'w2': 0.05 * jax.random.normal(ks[4], (original_64, original_256), jnp.float32),
        'b2': jnp.zeros((original_64,), jnp.float32),
    }
    params = fuse_params(raw_params)

    target_probs, target_jet = selected_target_head(
        autoregressive_embedding, level1_action, entity_embeddings,
        params, rng_key=ks[5], temperature=temperature)
    jax.block_until_ready((target_probs, target_jet))

    # Structural checks (match the reference module's output contract).
    assert target_probs.shape == (B, 1) and target_probs.dtype == jnp.float32
    assert target_jet.shape == (B, 1) and target_jet.dtype == jnp.int32
    assert 0 <= int(target_jet[0, 0]) < E          # row 0 sampled a valid entity
    assert int(target_jet[1, 0]) == E - 1          # row 1 has no valid target

    # Numerical sanity: kernel log-prob vs. pure-JAX f32 log_softmax at the
    # reported index (unfused reference path).
    mask_ref = generate_target_mask(level1_action, E)
    ent_f32 = entity_embeddings.astype(jnp.float32)
    ar_f32 = autoregressive_embedding.astype(jnp.float32)
    key_ref = jnp.einsum('bed,kd->bek', ent_f32, raw_params['wc']) + raw_params['bc']
    x_ref = ar_f32 @ raw_params['w1'].T + raw_params['b1']
    query_ref = x_ref @ raw_params['w2'].T + raw_params['b2']
    y_ref = jnp.einsum('bek,bk->be', key_ref, query_ref)
    logits_ref = jnp.where(mask_ref, y_ref, NEG_FILL) / temperature
    logp_ref = jax.nn.log_softmax(logits_ref, axis=-1)
    ref_sel = jnp.take_along_axis(logp_ref, target_jet, axis=-1)
    assert jnp.allclose(target_probs, ref_sel, atol=0.1), (target_probs, ref_sel)

    print("KERNEL_OK")
</pallas_src>

<mosaic_0001>
module attributes {stable_mosaic.version = 11 : i64} {
  func.func @_selected_target_kernel(%arg0: i32, %arg1: memref<16x8x32xbf16, #tpu.memory_space<vmem>>, %arg2: memref<16x32xbf16, #tpu.memory_space<vmem>>, %arg3: memref<16x8xi32, #tpu.memory_space<vmem>>, %arg4: memref<16x8xf32, #tpu.memory_space<vmem>>, %arg5: memref<32x33xbf16, #tpu.memory_space<vmem>>, %arg6: memref<1x33xf32, #tpu.memory_space<vmem>>, %arg7: memref<16x128xf32, #tpu.memory_space<vmem>>, %arg8: memref<16x128xi32, #tpu.memory_space<vmem>>) attributes {dimension_semantics = [#tpu.dimension_semantics<parallel>], iteration_bounds = array<i64: 1>, scalar_prefetch = 0 : i64, scratch_operands = 0 : i64, tpu.core_type = #tpu.core_type<tc>, window_params = [{transform_indices = @transform_0, window_bounds = array<i64: 16, 8, 32>}, {transform_indices = @transform_1, window_bounds = array<i64: 16, 32>}, {transform_indices = @transform_2, window_bounds = array<i64: 16, 8>}, {transform_indices = @transform_3, window_bounds = array<i64: 16, 8>}, {pipeline_mode = #tpu.pipeline_mode<synchronous>, transform_indices = @transform_4, window_bounds = array<i64: 32, 33>}, {pipeline_mode = #tpu.pipeline_mode<synchronous>, transform_indices = @transform_5, window_bounds = array<i64: 1, 33>}, {transform_indices = @transform_6, window_bounds = array<i64: 16, 128>}, {transform_indices = @transform_7, window_bounds = array<i64: 16, 128>}]} {
    %c0 = arith.constant 0 : index
    %c0_0 = arith.constant 0 : index
    %c0_1 = arith.constant 0 : index
    %0 = vector.load %arg1[%c0, %c0_0, %c0_1] : memref<16x8x32xbf16, #tpu.memory_space<vmem>>, vector<16x8x32xbf16>
    %c0_2 = arith.constant 0 : index
    %c0_3 = arith.constant 0 : index
    %1 = vector.load %arg2[%c0_2, %c0_3] : memref<16x32xbf16, #tpu.memory_space<vmem>>, vector<16x32xbf16>
    %c0_4 = arith.constant 0 : index
    %c0_5 = arith.constant 0 : index
    %2 = vector.load %arg3[%c0_4, %c0_5] : memref<16x8xi32, #tpu.memory_space<vmem>>, vector<16x8xi32>
    %c0_6 = arith.constant 0 : index
    %c0_7 = arith.constant 0 : index
    %3 = vector.load %arg4[%c0_6, %c0_7] : memref<16x8xf32, #tpu.memory_space<vmem>>, vector<16x8xf32>
    %c0_8 = arith.constant 0 : index
    %c0_9 = arith.constant 0 : index
    %4 = vector.load %arg5[%c0_8, %c0_9] : memref<32x33xbf16, #tpu.memory_space<vmem>>, vector<32x33xbf16>
    %c0_10 = arith.constant 0 : index
    %c0_11 = arith.constant 0 : index
    %5 = vector.load %arg6[%c0_10, %c0_11] : memref<1x33xf32, #tpu.memory_space<vmem>>, vector<1x33xf32>
    %cst = arith.constant dense<0.000000e+00> : vector<16x33xf32>
    %6 = tpu.matmul %1, %4, %cst {dimension_numbers = #tpu.dot_dimension_numbers<[1], [0], [0], [1], [0, 0, 1, 1], [], []>} : vector<16x32xbf16>, vector<32x33xbf16>, vector<16x33xf32> -> vector<16x33xf32>
    %7 = vector.broadcast %5 : vector<1x33xf32> to vector<16x33xf32>
    %8 = arith.addf %6, %7 : vector<16x33xf32>
    %9 = vector.extract_strided_slice %8 {offsets = [0, 0], sizes = [16, 32], strides = [1, 1]} : vector<16x33xf32> to vector<16x32xf32>
    %10 = vector.extract_strided_slice %8 {offsets = [0, 32], sizes = [16, 1], strides = [1, 1]} : vector<16x33xf32> to vector<16x1xf32>
    %11 = arith.truncf %9 : vector<16x32xf32> to vector<16x32xbf16>
    %12 = vector.shape_cast %11 : vector<16x32xbf16> to vector<16x1x32xbf16>
    %13 = vector.broadcast %12 : vector<16x1x32xbf16> to vector<16x8x32xbf16>
    %14 = arith.mulf %0, %13 : vector<16x8x32xbf16>
    %15 = arith.extf %14 : vector<16x8x32xbf16> to vector<16x8x32xf32>
    %cst_12 = arith.constant dense<0.000000e+00> : vector<16x8xf32>
    %16 = vector.multi_reduction <add>, %15, %cst_12 [2] : vector<16x8x32xf32> to vector<16x8xf32>
    %17 = vector.broadcast %10 : vector<16x1xf32> to vector<16x8xf32>
    %18 = arith.addf %16, %17 : vector<16x8xf32>
    %c0_i32 = arith.constant 0 : i32
    %19 = vector.broadcast %c0_i32 : i32 to vector<16x8xi32>
    %20 = arith.cmpi sgt, %2, %19 : vector<16x8xi32>
    %cst_13 = arith.constant -1.000000e+09 : f32
    %21 = vector.broadcast %cst_13 : f32 to vector<16x8xf32>
    %22 = arith.select %20, %18, %21 : vector<16x8xi1>, vector<16x8xf32>
    %cst_14 = arith.constant 1.250000e+00 : f32
    %23 = vector.broadcast %cst_14 : f32 to vector<16x8xf32>
    %24 = arith.mulf %22, %23 : vector<16x8xf32>
    %cst_15 = arith.constant dense<0xFF800000> : vector<16xf32>
    %25 = vector.multi_reduction <maximumf>, %24, %cst_15 [1] : vector<16x8xf32> to vector<16xf32>
    %26 = vector.shape_cast %25 : vector<16xf32> to vector<16x1xf32>
    %27 = vector.broadcast %26 : vector<16x1xf32> to vector<16x8xf32>
    %28 = arith.subf %24, %27 : vector<16x8xf32>
    %29 = math.exp %28 : vector<16x8xf32>
    %cst_16 = arith.constant dense<0.000000e+00> : vector<16xf32>
    %30 = vector.multi_reduction <add>, %29, %cst_16 [1] : vector<16x8xf32> to vector<16xf32>
    %31 = vector.shape_cast %30 : vector<16xf32> to vector<16x1xf32>
    %32 = math.log %31 : vector<16x1xf32>
    %33 = arith.addf %28, %3 : vector<16x8xf32>
    %cst_17 = arith.constant dense<0xFF800000> : vector<16xf32>
    %34 = vector.multi_reduction <maximumf>, %33, %cst_17 [1] : vector<16x8xf32> to vector<16xf32>
    %35 = vector.shape_cast %34 : vector<16xf32> to vector<16x1xf32>
    %36 = tpu.iota {dimensions = array<i32: 1>} : vector<16x8xi32>
    %37 = vector.broadcast %35 : vector<16x1xf32> to vector<16x8xf32>
    %38 = arith.cmpf oge, %33, %37 : vector<16x8xf32>
    %c8_i32 = arith.constant 8 : i32
    %39 = vector.broadcast %c8_i32 : i32 to vector<16x8xi32>
    %40 = arith.select %38, %36, %39 : vector<16x8xi1>, vector<16x8xi32>
    %cst_18 = arith.constant dense<2147483647> : vector<16xi32>
    %41 = vector.multi_reduction <minsi>, %40, %cst_18 [1] : vector<16x8xi32> to vector<16xi32>
    %42 = vector.shape_cast %41 : vector<16xi32> to vector<16x1xi32>
    %43 = vector.broadcast %42 : vector<16x1xi32> to vector<16x8xi32>
    %44 = arith.cmpi eq, %36, %43 : vector<16x8xi32>
    %cst_19 = arith.constant 0xFF800000 : f32
    %45 = vector.broadcast %cst_19 : f32 to vector<16x8xf32>
    %46 = arith.select %44, %28, %45 : vector<16x8xi1>, vector<16x8xf32>
    %cst_20 = arith.constant dense<0xFF800000> : vector<16xf32>
    %47 = vector.multi_reduction <maximumf>, %46, %cst_20 [1] : vector<16x8xf32> to vector<16xf32>
    %48 = vector.shape_cast %47 : vector<16xf32> to vector<16x1xf32>
    %49 = arith.subf %48, %32 : vector<16x1xf32>
    %cst_21 = arith.constant dense<-2147483648> : vector<16xi32>
    %50 = vector.multi_reduction <maxsi>, %2, %cst_21 [1] : vector<16x8xi32> to vector<16xi32>
    %51 = vector.shape_cast %50 : vector<16xi32> to vector<16x1xi32>
    %c0_i32_22 = arith.constant 0 : i32
    %52 = vector.broadcast %c0_i32_22 : i32 to vector<16x1xi32>
    %53 = arith.cmpi sgt, %51, %52 : vector<16x1xi32>
    %c7_i32 = arith.constant 7 : i32
    %54 = vector.broadcast %c7_i32 : i32 to vector<16x1xi32>
    %55 = arith.select %53, %42, %54 : vector<16x1xi1>, vector<16x1xi32>
    %56 = tpu.iota {dimensions = array<i32: 1>} : vector<16x128xi32>
    %c0_i32_23 = arith.constant 0 : i32
    %57 = vector.broadcast %c0_i32_23 : i32 to vector<16x128xi32>
    %58 = arith.cmpi eq, %56, %57 : vector<16x128xi32>
    %cst_24 = arith.constant 0.000000e+00 : f32
    %59 = vector.shape_cast %49 : vector<16x1xf32> to vector<16x1xf32>
    %60 = vector.broadcast %59 : vector<16x1xf32> to vector<16x128xf32>
    %61 = vector.broadcast %cst_24 : f32 to vector<16x128xf32>
    %62 = arith.select %58, %60, %61 : vector<16x128xi1>, vector<16x128xf32>
    %c0_25 = arith.constant 0 : index
    %c0_26 = arith.constant 0 : index
    %63 = vector.load %arg7[%c0_25, %c0_26] : memref<16x128xf32, #tpu.memory_space<vmem>>, vector<16x128xf32>
    tpu.vector_store %arg7[%c0_25, %c0_26], %62 {strides = array<i32>} : memref<16x128xf32, #tpu.memory_space<vmem>>, vector<16x128xf32>,
    %c0_i32_27 = arith.constant 0 : i32
    %64 = vector.broadcast %c0_i32_27 : i32 to vector<16x128xi32>
    %65 = arith.cmpi eq, %56, %64 : vector<16x128xi32>
    %c0_i32_28 = arith.constant 0 : i32
    %66 = vector.shape_cast %55 : vector<16x1xi32> to vector<16x1xi32>
    %67 = vector.broadcast %66 : vector<16x1xi32> to vector<16x128xi32>
    %68 = vector.broadcast %c0_i32_28 : i32 to vector<16x128xi32>
    %69 = arith.select %65, %67, %68 : vector<16x128xi1>, vector<16x128xi32>
    %c0_29 = arith.constant 0 : index
    %c0_30 = arith.constant 0 : index
    %70 = vector.load %arg8[%c0_29, %c0_30] : memref<16x128xi32, #tpu.memory_space<vmem>>, vector<16x128xi32>
    tpu.vector_store %arg8[%c0_29, %c0_30], %69 {strides = array<i32>} : memref<16x128xi32, #tpu.memory_space<vmem>>, vector<16x128xi32>,
    return
  }
  func.func @transform_0(%arg0: i32) -> (i32, i32, i32) {
    %c0_i32 = arith.constant 0 : i32
    %c0_i32_0 = arith.constant 0 : i32
    %c0_i32_1 = arith.constant 0 : i32
    return %arg0, %c0_i32, %c0_i32_0 : i32, i32, i32
  }
  func.func @transform_1(%arg0: i32) -> (i32, i32) {
    %c0_i32 = arith.constant 0 : i32
    %c0_i32_0 = arith.constant 0 : i32
    return %arg0, %c0_i32 : i32, i32
  }
  func.func @transform_2(%arg0: i32) -> (i32, i32) {
    %c0_i32 = arith.constant 0 : i32
    %c0_i32_0 = arith.constant 0 : i32
    return %arg0, %c0_i32 : i32, i32
  }
  func.func @transform_3(%arg0: i32) -> (i32, i32) {
    %c0_i32 = arith.constant 0 : i32
    %c0_i32_0 = arith.constant 0 : i32
    return %arg0, %c0_i32 : i32, i32
  }
  func.func @transform_4(%arg0: i32) -> (i32, i32) {
    %c0_i32 = arith.constant 0 : i32
    %c0_i32_0 = arith.constant 0 : i32
    %c0_i32_1 = arith.constant 0 : i32
    return %c0_i32, %c0_i32_0 : i32, i32
  }
  func.func @transform_5(%arg0: i32) -> (i32, i32) {
    %c0_i32 = arith.constant 0 : i32
    %c0_i32_0 = arith.constant 0 : i32
    %c0_i32_1 = arith.constant 0 : i32
    return %c0_i32, %c0_i32_0 : i32, i32
  }
  func.func @transform_6(%arg0: i32) -> (i32, i32) {
    %c0_i32 = arith.constant 0 : i32
    %c0_i32_0 = arith.constant 0 : i32
    return %arg0, %c0_i32 : i32, i32
  }
  func.func @transform_7(%arg0: i32) -> (i32, i32) {
    %c0_i32 = arith.constant 0 : i32
    %c0_i32_0 = arith.constant 0 : i32
    return %arg0, %c0_i32 : i32, i32
  }
}

</mosaic_0001>

<bundles_post_ra>
// kernel: tpu_custom_call.1
= control target key start
LH: loop header
LB: loop body
LE: loop exit
PB: predicated region body
PF: predicated region fallthrough
CT: control target
= control target key end

     0   :  { %13 = vsyncpa [#allocation3], 0  ;;  %s1095_s0 = inlined_call_operand.hbm [shape: bf16[16,8,32], index: 0, kind: input, shape index: {}]   ;;  %s1096_s1 = inlined_call_operand.vmem [shape: bf16[16,32], index: 1, kind: input, shape index: {}]   ;;  %s1097_s2 = inlined_call_operand.vmem [shape: s32[16,8], index: 2, kind: input, shape index: {}]   ;;  %s1098_s3 = inlined_call_operand.vmem [shape: f32[16,8], index: 3, kind: input, shape index: {}]   ;;  %s1099_s4 = inlined_call_operand.vmem [shape: bf16[32,33], index: 4, kind: input, shape index: {}]   ;;  %s1100_s5 = inlined_call_operand.vmem [shape: f32[1,33], index: 5, kind: input, shape index: {}]   ;;  %s1101_s6 = inlined_call_operand.hbm [shape: f32[16,128], index: 6, kind: output, shape index: {0}]   ;;  %s1102_s7 = inlined_call_operand.hbm [shape: s32[16,128], index: 7, kind: output, shape index: {1}]  }
   0x1   :  { %14 = vsyncpa [#allocation4], 0 }
   0x2   :  { %15 = vsyncpa [#allocation7], 0  ;;  %s20_s26 = sshll.u32 %s1095_s0, 4  ;;  %s869_s27 = smov [#allocation2]   ;;  %s21_s26 = int_to_ptr.hbm [resolvable:$true] %s20_s26 }
   0x3   :  { %s22_s28 = sshll.u32 %s869_s27, 4  ;;  %s870_s29 = smov 64   ;;  %s23_s28 = int_to_ptr.vmem [resolvable:$true] %s22_s28 }
   0x4   :  { %s871_s30 = smov 4  }
   0x5   :  { %28 = dma.hbm_to_vmem [thread:$0]  %s21_s26, 1024, %s23_s28, [#allocation3], %s870_s29, %s870_s29, %s871_s30  }
   0x6   :  { %863 = dma.done.wait [#allocation3], 1024  }
   0x7   :  { %864 = vsyncadd [#allocation3], 4294966272  ;;  %v729_v0 = vld [vmem:[%s1099_s4 + $0x8] sm:$0xff]  ;;  %v728_v1 = vld [vmem:[%s1099_s4] sm:$0xff]  ;;  %vm91_vm0 = vcmask 261120   ;;  %v872_v3 = vmov 32  }
   0x8   :  { %101 = vmatpush.bf16.msra.mxu0 %v729_v0  ;;  %v727_v2 = vld [vmem:[%s1096_s1] sm:$0xff]  ;;  %778 = vset.pattern.permute.xlu0 %v872_v3  ;;  %vm115_vm1 = vcmask 1040384   ;;  %vm124_vm2 = vcmask 1042434   ;;  %vm128_vm3 = vcmask 1043459   ;;  %vm120_vm4 = vcmask 1041409   ;;  %v938_v16 = vld [vmem:[#allocation2 + $0x10] sm:$0xff]  }
   0x9   :  { %v782_v4 = vld [vmem:[%s1100_s5] ss:$0 sm:$0xff]  ;;  %v740_v28 = vunpack.c.l.bf16 %v938_v16  ;;  %v947_v33 = vld [vmem:[#allocation2 + $0x18] sm:$0xff]   ;;  %vm528_vm5 = vcmask 1044484   ;;  %vm530_vm6 = vcmask 1045509   ;;  %vm532_vm7 = vcmask 1046534  }
   0xa   :  { %v731_v14 = vld [vmem:[#allocation2] sm:$0xff]   ;;  %v744_v43 = vunpack.c.l.bf16 %v947_v33  ;;  %vm534_vm8 = vcmask 1047559   ;;  %vm549_vm10 = vcmask 64512   ;;  %s688_s22 = sshll.u32 %s1102_s7, 4  ;;  %s875_s23 = smov [#allocation5]   ;;  %s689_s22 = int_to_ptr.hbm [resolvable:$true] %s688_s22 }
   0xb   :  { %v732_v27 = vunpack.c.l.bf16 %v731_v14  ;;  %v733_v36 = vunpack.c.h.bf16 %v731_v14  ;;  %s673_s24 = sshll.u32 %s875_s23, 4  ;;  %s675_s27 = sshll.u32 %s1101_s6, 4  ;;  %s674_s24 = int_to_ptr.vmem [resolvable:$true] %s673_s24  ;;  %s676_s27 = int_to_ptr.hbm [resolvable:$true] %s675_s27 }
   0xc   :  { %102 = vmatpush.bf16.msra.mxu0 %v728_v1  ;;  %s876_s28 = smov 128   ;;  %s877_s7 = smov 8  }
   0xf   :  { %718 = vmatmul.msk.bf16.vlgmr.msra.gmra.mxu0 %vm91_vm0, %v727_v2 }
  0x8c   :  { %v104_v5 = vpop.f32.mrf.mxu0 }
  0x8d   :  { %v105_v6 = vadd.f32 %v782_v4, %v104_v5 }
  0x8f   :  { %v109_v7 = vpack.c.bf16 %v105_v6, %v105_v6  ;;  %387 = vperm.xlu0 %778, %v105_v6  }
  0x91   :  { %v113_v8 = vrot.slane %v109_v7, 3 }
  0x93   :  { %v118_v9 = vsel %vm115_vm1, %v109_v7, %v113_v8  ;;  %v125_v10 = vsel %vm124_vm2, %v109_v7, %v113_v8  ;;  %v129_v11 = vsel %vm128_vm3, %v109_v7, %v113_v8  ;;  %v121_v12 = vsel %vm120_vm4, %v109_v7, %v113_v8  ;;  %v963_v8 = vld [vmem:[#allocation2 + $0x28] sm:$0xff]  }
  0x94   :  { %v106_v13 = vpop.f32.mrf.mxu0  ;;  %v719_v15 = vpack.i.b16 %v118_v9, %v118_v9  ;;  %v127_v17 = vrot.slane %v125_v10, 2  ;;  %v146_v18 = vunpack.i.h.s16 %v118_v9  ;;  %v940_v19 = vrot.slane %v129_v11, 3  ;;  %v762_v11 = vld [vmem:[#allocation2 + $0x8] sm:$0xff]  }
  0x95   :  { %v107_v20 = vadd.f32 %v782_v4, %v106_v13  ;;  %v123_v21 = vrot.slane %v121_v12, 1 }
  0x96   :  { %v177_v22 = vperm.slane %v719_v15, 0  ;;  %v721_v23 = vpack.i.b16 %v127_v17, %v127_v17  ;;  %v162_v24 = vpack.i.b16 %v146_v18, %v146_v18  ;;  %v722_v25 = vpack.i.b16 %v940_v19, %v940_v19 }
  0x97   :  { %v944_v26 = vpack.c.bf16 %v107_v20, %v107_v20  ;;  %391 = vperm.xlu0 %778, %v107_v20   ;;  %v148_v29 = vunpack.i.h.s16 %v123_v21  ;;  %v150_v38 = vunpack.i.h.s16 %v127_v17  ;;  %v720_v61 = vpack.i.b16 %v123_v21, %v123_v21 }
  0x98   :  { %v194_v30 = vpack.i.b16 %v177_v22, %v177_v22  ;;  %v181_v31 = vperm.slane %v721_v23, 0  ;;  %v178_v32 = vperm.slane %v162_v24, 0  ;;  %v183_v34 = vperm.slane %v722_v25, 0  ;;  %v968_v25 = vld [vmem:[#allocation2 + $0x30] sm:$0xff]  }
  0x99   :  { %v950_v35 = vrot.slane %v944_v26, 3  ;;  %v164_v37 = vpack.i.b16 %v148_v29, %v148_v29  ;;  %v166_v54 = vpack.i.b16 %v150_v38, %v150_v38  ;;  %v179_v13 = vperm.slane %v720_v61, 0 }
  0x9a   :  { %v196_v39 = vperm.slane %v194_v30, 0  ;;  %v210_v40 = vpack.i.b16 %v181_v31, %v181_v31  ;;  %v198_v41 = vpack.i.b16 %v178_v32, %v178_v32  ;;  %v218_v42 = vpack.i.b16 %v183_v34, %v183_v34 }
  0x9b   :  { %v136_v44 = vsel %vm120_vm4, %v944_v26, %v950_v35  ;;  %v180_v45 = vperm.slane %v164_v37, 0  ;;  %v139_v46 = vsel %vm124_vm2, %v944_v26, %v950_v35  ;;  %v182_v4 = vperm.slane %v166_v54, 0 }
  0x9c   :  { %v273_v47 = vunpack.c.l.bf16 %v196_v39  ;;  %v212_v48 = vperm.slane %v210_v40, 0  ;;  %v200_v49 = vperm.slane %v198_v41, 0  ;;  %v220_v50 = vperm.slane %v218_v42, 0 }
  0x9d   :  { %v138_v51 = vrot.slane %v136_v44, 1  ;;  %v206_v52 = vpack.i.b16 %v180_v45, %v180_v45  ;;  %v959_v53 = vrot.slane %v139_v46, 2  ;;  %v737_v17 = vunpack.c.h.bf16 %v762_v11 }
  0x9e   :  { %v289_v55 = vmul.f32 %v732_v27, %v273_v47  ;;  %v277_v56 = vunpack.c.l.bf16 %v212_v48  ;;  %v274_v57 = vunpack.c.l.bf16 %v200_v49  ;;  %v279_v58 = vunpack.c.l.bf16 %v220_v50 }
  0x9f   :  { %v724_v59 = vpack.i.b16 %v138_v51, %v138_v51  ;;  %v725_v60 = vpack.i.b16 %v959_v53, %v959_v53  ;;  %v208_v2 = vperm.slane %v206_v52, 0  ;;  %v752_v18 = vunpack.c.l.bf16 %v963_v8 }
  0xa0   :  { %v305_v62 = vpack.c.bf16 %v289_v55, %v289_v55  ;;  %v293_v63 = vmul.f32 %v740_v28, %v277_v56  ;;  %v290_v0 = vmul.f32 %v733_v36, %v274_v57  ;;  %v295_v7 = vmul.f32 %v744_v43, %v279_v58 }
  0xa1   :  { %v187_v1 = vperm.slane %v724_v59, 0  ;;  %v189_v3 = vperm.slane %v725_v60, 0  ;;  %v276_v21 = vunpack.c.l.bf16 %v208_v2  ;;  %v214_v22 = vpack.i.b16 %v182_v4, %v182_v4  ;;  %v985_v60 = vld [vmem:[#allocation2 + $0x38] sm:$0xff]  }
  0xa2   :  { %v321_v5 = vunpack.c.l.bf16 %v305_v62  ;;  %v309_v6 = vpack.c.bf16 %v293_v63, %v293_v63  ;;  %v306_v9 = vpack.c.bf16 %v290_v0, %v290_v0  ;;  %v311_v24 = vpack.c.bf16 %v295_v7, %v295_v7 }
  0xa3   :  { %v234_v10 = vpack.i.b16 %v187_v1, %v187_v1  ;;  %v242_v12 = vpack.i.b16 %v189_v3, %v189_v3  ;;  %v202_v30 = vpack.i.b16 %v179_v13, %v179_v13  ;;  %v142_v31 = vsel %vm128_vm3, %v944_v26, %v950_v35 }
  0xa4   :  { %v337_v14 = vsel %vm91_vm0, %v321_v5, 0.0  ;;  %v325_v15 = vunpack.c.l.bf16 %v309_v6  ;;  %v322_v27 = vunpack.c.l.bf16 %v306_v9  ;;  %v152_v32 = vunpack.i.h.s16 %v940_v19 }
  0xa5   :  { %338 = vadd.xlane.f32.xlu1 %v337_v14  ;;  %v236_v20 = vperm.slane %v234_v10, 0  ;;  %v244_v29 = vperm.slane %v242_v12, 0  ;;  %v292_v36 = vmul.f32 %v737_v17, %v276_v21  ;;  %v756_v37 = vunpack.c.l.bf16 %v968_v25 }
  0xa6   :  { %v349_v23 = vsel %vm91_vm0, %v325_v15, 0.0  ;;  %v216_v38 = vperm.slane %v214_v22, 0  ;;  %v327_v39 = vunpack.c.l.bf16 %v311_v24  ;;  %v975_v40 = vrot.slane %v142_v31, 3 }
  0xa7   :  { %350 = vadd.xlane.f32.xlu2 %v349_v23  ;;  %v283_v28 = vunpack.c.l.bf16 %v236_v20  ;;  %v168_v41 = vpack.i.b16 %v152_v32, %v152_v32  ;;  %v156_v42 = vunpack.i.h.s16 %v138_v51  ;;  %v340_v43 = vsel %vm91_vm0, %v322_v27, 0.0 }
  0xa8   :  { %v285_v44 = vunpack.c.l.bf16 %v244_v29  ;;  %v204_v45 = vperm.slane %v202_v30, 0  ;;  %v134_v46 = vsel %vm115_vm1, %v944_v26, %v950_v35  ;;  %v726_v19 = vpack.i.b16 %v975_v40, %v975_v40 }
  0xa9   :  { %v299_v34 = vmul.f32 %v752_v18, %v283_v28  ;;  %v184_v48 = vperm.slane %v168_v41, 0  ;;  %v172_v49 = vpack.i.b16 %v156_v42, %v156_v42  ;;  %v308_v50 = vpack.c.bf16 %v292_v36, %v292_v36  ;;  %v765_v36 = vld [vmem:[#allocation2 + $0x20] sm:$0xff]  }
  0xaa   :  { %v741_v52 = vunpack.c.h.bf16 %v938_v16  ;;  %v278_v54 = vunpack.c.l.bf16 %v216_v38  ;;  %v355_v51 = vsel %vm91_vm0, %v327_v39, 0.0  ;;  %v191_v55 = vperm.slane %v726_v19, 0 }
  0xab   :  { %v315_v47 = vpack.c.bf16 %v299_v34, %v299_v34  ;;  %v222_v56 = vpack.i.b16 %v184_v48, %v184_v48  ;;  %v723_v57 = vpack.i.b16 %v134_v46, %v134_v46  ;;  %v301_v58 = vmul.f32 %v756_v37, %v285_v44 }
  0xac   :  { %v736_v59 = vunpack.c.l.bf16 %v762_v11  ;;  %v275_v26 = vunpack.c.l.bf16 %v204_v45  ;;  %v250_v61 = vpack.i.b16 %v191_v55, %v191_v55  ;;  %v188_v62 = vperm.slane %v172_v49, 0 }
  0xad   :  { %341 = vadd.xlane.f32.xlu1 %v340_v43  ;;  %v331_v35 = vunpack.c.l.bf16 %v315_v47  ;;  %v158_v63 = vunpack.i.h.s16 %v959_v53  ;;  %v324_v0 = vunpack.c.l.bf16 %v308_v50  ;;  %v294_v1 = vmul.f32 %v741_v52, %v278_v54 }
  0xae   :  { %v252_v16 = vperm.slane %v250_v61, 0  ;;  %v224_v2 = vperm.slane %v222_v56, 0  ;;  %v185_v3 = vperm.slane %v723_v57, 0  ;;  %v154_v4 = vunpack.i.h.s16 %v134_v46 }
  0xaf   :  { %356 = vadd.xlane.f32.xlu2 %v355_v51  ;;  %v317_v5 = vpack.c.bf16 %v301_v58, %v301_v58  ;;  %v291_v6 = vmul.f32 %v736_v59, %v275_v26  ;;  %v760_v7 = vunpack.c.l.bf16 %v985_v60  ;;  %v367_v9 = vsel %vm91_vm0, %v331_v35, 0.0 }
  0xb0   :  { %v287_v10 = vunpack.c.l.bf16 %v252_v16  ;;  %v238_v11 = vpack.i.b16 %v188_v62, %v188_v62  ;;  %v174_v12 = vpack.i.b16 %v158_v63, %v158_v63  ;;  %v310_v13 = vpack.c.bf16 %v294_v1, %v294_v1 }
  0xb1   :  { %v745_v14 = vunpack.c.h.bf16 %v947_v33  ;;  %v346_v53 = vsel %vm91_vm0, %v324_v0, 0.0  ;;  %v280_v15 = vunpack.c.l.bf16 %v224_v2  ;;  %v226_v17 = vpack.i.b16 %v185_v3, %v185_v3 }
  0xb2   :  { %v170_v18 = vpack.i.b16 %v154_v4, %v154_v4  ;;  %v333_v20 = vunpack.c.l.bf16 %v317_v5  ;;  %v307_v21 = vpack.c.bf16 %v291_v6, %v291_v6  ;;  %v303_v22 = vmul.f32 %v760_v7, %v287_v10 }
  0xb3   :  { %v240_v23 = vperm.slane %v238_v11, 0  ;;  %v190_v24 = vperm.slane %v174_v12, 0  ;;  %v160_v27 = vunpack.i.h.s16 %v975_v40  ;;  %v326_v28 = vunpack.c.l.bf16 %v310_v13 }
  0xb4   :  { %v296_v29 = vmul.f32 %v745_v14, %v280_v15  ;;  %v228_v30 = vperm.slane %v226_v17, 0  ;;  %v186_v31 = vperm.slane %v170_v18, 0  ;;  %v373_v32 = vsel %vm91_vm0, %v333_v20, 0.0 }
  0xb5   :  { %368 = vadd.xlane.f32.xlu1 %v367_v9  ;;  %v323_v33 = vunpack.c.l.bf16 %v307_v21  ;;  %v753_v34 = vunpack.c.h.bf16 %v963_v8  ;;  %v319_v37 = vpack.c.bf16 %v303_v22, %v303_v22  ;;  %v284_v38 = vunpack.c.l.bf16 %v240_v23 }
  0xb6   :  { %v246_v39 = vpack.i.b16 %v190_v24, %v190_v24  ;;  %v176_v41 = vpack.i.b16 %v160_v27, %v160_v27  ;;  %v352_v42 = vsel %vm91_vm0, %v326_v28, 0.0  ;;  %v312_v43 = vpack.c.bf16 %v296_v29, %v296_v29 }
  0xb7   :  { %347 = vadd.xlane.f32.xlu2 %v346_v53  ;;  %v748_v44 = vunpack.c.l.bf16 %v765_v36  ;;  %v281_v40 = vunpack.c.l.bf16 %v228_v30  ;;  %v230_v45 = vpack.i.b16 %v186_v31, %v186_v31  ;;  %v343_v46 = vsel %vm91_vm0, %v323_v33, 0.0 }
  0xb8   :  { %v335_v47 = vunpack.c.l.bf16 %v319_v37  ;;  %v300_v19 = vmul.f32 %v753_v34, %v284_v38  ;;  %v248_v48 = vperm.slane %v246_v39, 0  ;;  %v192_v49 = vperm.slane %v176_v41, 0 }
  0xb9   :  { %v328_v8 = vunpack.c.l.bf16 %v312_v43  ;;  %v297_v50 = vmul.f32 %v748_v44, %v281_v40  ;;  %v232_v52 = vperm.slane %v230_v45, 0  ;;  %v757_v54 = vunpack.c.h.bf16 %v968_v25 }
  0xba   :  { %v379_v51 = vsel %vm91_vm0, %v335_v47, 0.0  ;;  %v316_v55 = vpack.c.bf16 %v300_v19, %v300_v19  ;;  %v286_v56 = vunpack.c.l.bf16 %v248_v48  ;;  %v254_v57 = vpack.i.b16 %v192_v49, %v192_v49 }
  0xbb   :  { %v358_v58 = vsel %vm91_vm0, %v328_v8, 0.0  ;;  %v313_v59 = vpack.c.bf16 %v297_v50, %v297_v50  ;;  %v749_v26 = vunpack.c.h.bf16 %v765_v36  ;;  %v282_v35 = vunpack.c.l.bf16 %v232_v52 }
  0xbc   :  { %v332_v61 = vunpack.c.l.bf16 %v316_v55  ;;  %v302_v62 = vmul.f32 %v757_v54, %v286_v56  ;;  %v256_v63 = vperm.slane %v254_v57, 0  ;;  %v761_v2 = vunpack.c.h.bf16 %v985_v60 }
  0xbd   :  { %374 = vadd.xlane.f32.xlu1 %v373_v32  ;;  %v329_v0 = vunpack.c.l.bf16 %v313_v59  ;;  %v298_v1 = vmul.f32 %v749_v26, %v282_v35  ;;  %v873_v60 = vmov 0  }
  0xbe   :  { %v370_v16 = vsel %vm91_vm0, %v332_v61, 0.0  ;;  %v318_v25 = vpack.c.bf16 %v302_v62, %v302_v62  ;;  %v288_v3 = vunpack.c.l.bf16 %v256_v63  ;;  %779 = vset.pattern.permute.xlu2 %v873_v60  ;;  %780 = vset.pattern.permute.xlu0 %v873_v60 }
  0xbf   :  { %353 = vadd.xlane.f32.xlu2 %v352_v42  ;;  %v361_v4 = vsel %vm91_vm0, %v329_v0, 0.0  ;;  %v314_v5 = vpack.c.bf16 %v298_v1, %v298_v1  ;;  %781 = vset.pattern.permute.xlu1 %v873_v60 }
  0xc0   :  { %v334_v6 = vunpack.c.l.bf16 %v318_v25  ;;  %v304_v7 = vmul.f32 %v761_v2, %v288_v3 }
  0xc1   :  { %344 = vadd.xlane.f32.xlu0 %v343_v46  ;;  %v330_v9 = vunpack.c.l.bf16 %v314_v5 }
  0xc2   :  { %v376_v10 = vsel %vm91_vm0, %v334_v6, 0.0  ;;  %v320_v11 = vpack.c.bf16 %v304_v7, %v304_v7  ;;  %v507_v7 = vlaneseq }
  0xc3   :  { %v364_v12 = vsel %vm91_vm0, %v330_v9, 0.0 }
  0xc4   :  { %v336_v13 = vunpack.c.l.bf16 %v320_v11 }
  0xc5   :  { %380 = vadd.xlane.f32.xlu1 %v379_v51 }
  0xc6   :  { %v382_v14 = vsel %vm91_vm0, %v336_v13, 0.0 }
  0xc7   :  { %359 = vadd.xlane.f32.xlu2 %v358_v58 }
  0xcd   :  { %371 = vadd.xlane.f32.xlu1 %v370_v16 }
  0xcf   :  { %362 = vadd.xlane.f32.xlu2 %v361_v4 }
  0xd5   :  { %377 = vadd.xlane.f32.xlu1 %v376_v10  ;;  %v1006_v10 = vand.u32 127, %v507_v7 }
  0xd7   :  { %365 = vadd.xlane.f32.xlu2 %v364_v12 }
  0xdd   :  { %383 = vadd.xlane.f32.xlu1 %v382_v14 }
 0x101   :  { %v388_v53 = vpop.permute.xlu0 %387 }
 0x102   :  { %v393_v15 = vperm.slane %v388_v53, 0  ;;  %v394_v21 = vperm.slane %v388_v53, 1  ;;  %v397_v27 = vperm.slane %v388_v53, 4  ;;  %v398_v33 = vperm.slane %v388_v53, 5 }
 0x103   :  { %v395_v37 = vperm.slane %v388_v53, 2  ;;  %v399_v43 = vperm.slane %v388_v53, 6  ;;  %v396_v47 = vperm.slane %v388_v53, 3  ;;  %v400_v57 = vperm.slane %v388_v53, 7 }
 0x109   :  { %v392_v31 = vpop.permute.xlu0 %391 }
 0x10a   :  { %v401_v45 = vperm.slane %v392_v31, 0  ;;  %v406_v49 = vperm.slane %v392_v31, 5  ;;  %v403_v50 = vperm.slane %v392_v31, 2  ;;  %v402_v55 = vperm.slane %v392_v31, 1 }
 0x10b   :  { %v404_v59 = vperm.slane %v392_v31, 3  ;;  %v405_v26 = vperm.slane %v392_v31, 4  ;;  %v407_v62 = vperm.slane %v392_v31, 6  ;;  %v408_v1 = vperm.slane %v392_v31, 7 }
 0x118   :  { %v339_v17 = vpop.xlane.xlu1 %338 }
 0x119   :  { %v425_v18 = vadd.f32 %v393_v15, %v339_v17 }
 0x11a   :  { %v351_v20 = vpop.xlane.xlu2 %350 }
 0x11b   :  { %460 = vperm.xlu2 %779, %v425_v18   ;;  %v429_v29 = vadd.f32 %v397_v27, %v351_v20  ;;  %v1021_v27 = vld [vmem:[%s1097_s2] sm:$0xff] }
 0x11c   :  { %vm441_vm9 = vcmp.gt.s32.totalorder %v1021_v27, 0 }
 0x120   :  { %v342_v22 = vpop.xlane.xlu1 %341 }
 0x121   :  { %v426_v23 = vadd.f32 %v394_v21, %v342_v22 }
 0x122   :  { %v357_v24 = vpop.xlane.xlu2 %356 }
 0x123   :  { %463 = vperm.xlu0 %780, %v426_v23   ;;  %v431_v44 = vadd.f32 %v399_v43, %v357_v24 }
 0x128   :  { %v369_v28 = vpop.xlane.xlu1 %368 }
 0x129   :  { %v435_v51 = vadd.f32 %v403_v50, %v369_v28 }
 0x12a   :  { %v348_v30 = vpop.xlane.xlu2 %347 }
 0x12b   :  { %472 = vperm.xlu0 %780, %v429_v29   ;;  %v428_v48 = vadd.f32 %v396_v47, %v348_v30 }
 0x130   :  { %v375_v32 = vpop.xlane.xlu1 %374 }
 0x131   :  { %v437_v61 = vadd.f32 %v405_v26, %v375_v32 }
 0x132   :  { %v354_v34 = vpop.xlane.xlu2 %353 }
 0x133   :  { %v430_v36 = vadd.f32 %v398_v33, %v354_v34 }
 0x134   :  { %v345_v38 = vpop.xlane.xlu0 %344 }
 0x135   :  { %v427_v39 = vadd.f32 %v395_v37, %v345_v38  ;;  %475 = vperm.xlu1 %781, %v430_v36  }
 0x137   :  { %466 = vperm.xlu2 %779, %v427_v39  }
 0x138   :  { %v381_v41 = vpop.xlane.xlu1 %380 }
 0x139   :  { %v439_v0 = vadd.f32 %v407_v62, %v381_v41 }
 0x13a   :  { %v360_v42 = vpop.xlane.xlu2 %359 }
 0x13b   :  { %v432_v58 = vadd.f32 %v400_v57, %v360_v42 }
 0x13f   :  { %478 = vperm.xlu2 %779, %v431_v44  }
 0x140   :  { %v372_v40 = vpop.xlane.xlu1 %371 }
 0x141   :  { %v436_v35 = vadd.f32 %v404_v59, %v372_v40 }
 0x142   :  { %v363_v46 = vpop.xlane.xlu2 %362 }
 0x143   :  { %v433_v19 = vadd.f32 %v401_v45, %v363_v46 }
 0x145   :  { %484 = vperm.xlu1 %781, %v433_v19  }
 0x147   :  { %469 = vperm.xlu2 %779, %v428_v48  }
 0x148   :  { %v378_v8 = vpop.xlane.xlu1 %377 }
 0x149   :  { %v438_v52 = vadd.f32 %v406_v49, %v378_v8  ;;  %v63_v49 = vld [vmem:[%s1097_s2 + $0x8] sm:$0xff] }
 0x14a   :  { %v366_v54 = vpop.xlane.xlu2 %365  ;;  %vm442_vm11 = vcmp.gt.s32.totalorder %v63_v49, 0 }
 0x14b   :  { %499 = vperm.xlu0 %780, %v438_v52   ;;  %v434_v56 = vadd.f32 %v402_v55, %v366_v54 }
 0x14d   :  { %490 = vperm.xlu1 %781, %v435_v51  }
 0x14f   :  { %487 = vperm.xlu2 %779, %v434_v56  }
 0x150   :  { %v384_v63 = vpop.xlane.xlu1 %383 }
 0x151   :  { %v440_v16 = vadd.f32 %v408_v1, %v384_v63  ;;  %v65_v1 = vld [vmem:[%s1098_s3 + $0x8] sm:$0xff] }
 0x153   :  { %481 = vperm.xlu0 %780, %v432_v58  }
 0x155   :  { %493 = vperm.xlu1 %781, %v436_v35   ;;  %v64_v35 = vld [vmem:[%s1098_s3] sm:$0xff]  ;;  %s874_s3 = smov [#allocation6]  }
 0x156   :  { %s686_s19 = sshll.u32 %s874_s3, 4  ;;  %s687_s19 = int_to_ptr.vmem [resolvable:$true] %s686_s19 }
 0x157   :  { %496 = vperm.xlu2 %779, %v437_v61  }
 0x15d   :  { %502 = vperm.xlu1 %781, %v439_v0  }
 0x15f   :  { %505 = vperm.xlu2 %779, %v440_v16  }
 0x175   :  { %v461_v25 = vpop.permute.xlu2 %460 }
 0x176   :  { %v509_v13 = vperm.slane %v461_v25, %v1006_v10 }
 0x191   :  { %v467_v2 = vpop.permute.xlu2 %466 }
 0x192   :  { %v511_v15 = vperm.slane %v467_v2, %v1006_v10 }
 0x195   :  { %v464_v4 = vpop.permute.xlu0 %463 }
 0x196   :  { %v510_v12 = vperm.slane %v464_v4, %v1006_v10 }
 0x198   :  { %v525_v60 = vsel %vm120_vm4, %v510_v12, %v509_v13 }
 0x199   :  { %v479_v3 = vpop.permute.xlu2 %478  ;;  %v526_v18 = vsel %vm124_vm2, %v511_v15, %v525_v60 }
 0x19a   :  { %v515_v30 = vperm.slane %v479_v3, %v1006_v10 }
 0x19d   :  { %v473_v9 = vpop.permute.xlu0 %472 }
 0x19e   :  { %v513_v23 = vperm.slane %v473_v9, %v1006_v10 }
 0x1a1   :  { %v470_v6 = vpop.permute.xlu2 %469 }
 0x1a2   :  { %v512_v53 = vperm.slane %v470_v6, %v1006_v10 }
 0x1a4   :  { %v527_v21 = vsel %vm128_vm3, %v512_v53, %v526_v18 }
 0x1a5   :  { %v529_v24 = vsel %vm528_vm5, %v513_v23, %v527_v21 }
 0x1a7   :  { %v476_v5 = vpop.permute.xlu1 %475 }
 0x1a8   :  { %v514_v22 = vperm.slane %v476_v5, %v1006_v10 }
 0x1a9   :  { %v488_v14 = vpop.permute.xlu2 %487 }
 0x1aa   :  { %v531_v28 = vsel %vm530_vm6, %v514_v22, %v529_v24  ;;  %v518_v36 = vperm.slane %v488_v14, %v1006_v10  ;;  %v626_v14 = vsel %vm549_vm10, %v1021_v27, 2147483648  ;;  %v641_v24 = vsel %vm549_vm10, %v63_v49, 2147483648 }
 0x1ab   :  { %v533_v38 = vsel %vm532_vm7, %v515_v30, %v531_v28  ;;  %v628_v53 = vshra.s32 %v626_v14, 16  ;;  %v643_v27 = vshra.s32 %v641_v24, 16 }
 0x1b1   :  { %v497_v29 = vpop.permute.xlu2 %496 }
 0x1b2   :  { %v521_v46 = vperm.slane %v497_v29, %v1006_v10  ;;  %v645_v29 = vcvt.s32.f32 %v643_v27 }
 0x1b7   :  { %v485_v11 = vpop.permute.xlu1 %484 }
 0x1b8   :  { %v517_v31 = vperm.slane %v485_v11, %v1006_v10 }
 0x1b9   :  { %v506_v19 = vpop.permute.xlu2 %505 }
 0x1ba   :  { %v536_v42 = vsel %vm120_vm4, %v518_v36, %v517_v31  ;;  %v524_v54 = vperm.slane %v506_v19, %v1006_v10  ;;  %v627_v36 = vand.u32 65535, %v626_v14  ;;  %vm660_vm4 = vcmp.eq.s32.totalorder %v1006_v10, 0 }
 0x1bd   :  { %v500_v17 = vpop.permute.xlu0 %499 }
 0x1be   :  { %v522_v8 = vperm.slane %v500_v17, %v1006_v10  ;;  %v630_v17 = vcvt.s32.f32 %v628_v53 }
 0x1bf   :  { %v491_v20 = vpop.permute.xlu1 %490 }
 0x1c0   :  { %v519_v33 = vperm.slane %v491_v20, %v1006_v10 }
 0x1c2   :  { %v537_v44 = vsel %vm124_vm2, %v519_v33, %v536_v42 }
 0x1c5   :  { %v482_v32 = vpop.permute.xlu0 %481 }
 0x1c6   :  { %v516_v34 = vperm.slane %v482_v32, %v1006_v10 }
 0x1c7   :  { %v494_v37 = vpop.permute.xlu1 %493 }
 0x1c8   :  { %v520_v39 = vperm.slane %v494_v37, %v1006_v10  ;;  %v535_v41 = vsel %vm534_vm8, %v516_v34, %v533_v38  ;;  %v629_v37 = vcvt.s32.f32 %v627_v36 }
 0x1c9   :  { %v545_v43 = vsel %vm441_vm9, %v535_v41, -1e+09 }
 0x1ca   :  { %v547_v40 = vmul.f32 1.25, %v545_v43  ;;  %v538_v45 = vsel %vm128_vm3, %v520_v39, %v537_v44 }
 0x1cb   :  { %v539_v48 = vsel %vm528_vm5, %v521_v46, %v538_v45  ;;  %v642_v46 = vand.u32 65535, %v641_v24 }
 0x1cc   :  { %v550_v47 = vsel %vm549_vm10, %v547_v40, -inf  ;;  %v540_v51 = vsel %vm530_vm6, %v522_v8, %v539_v48 }
 0x1cd   :  { %551 = vmax.xlane.f32.xlu1 %v550_v47  ;;  %v644_v48 = vcvt.s32.f32 %v642_v46 }
 0x1cf   :  { %v503_v50 = vpop.permute.xlu1 %502 }
 0x1d0   :  { %v523_v52 = vperm.slane %v503_v50, %v1006_v10 }
 0x1d2   :  { %v541_v55 = vsel %vm532_vm7, %v523_v52, %v540_v51 }
 0x1d3   :  { %v542_v56 = vsel %vm534_vm8, %v524_v54, %v541_v55 }
 0x1d4   :  { %v546_v57 = vsel %vm442_vm11, %v542_v56, -1e+09 }
 0x1d5   :  { %v548_v58 = vmul.f32 1.25, %v546_v57 }
 0x1d7   :  { %v553_v59 = vsel %vm549_vm10, %v548_v58, -inf }
 0x1d8   :  { %554 = vmax.xlane.f32.xlu0 %v553_v59 }
 0x240   :  { %v552_v26 = vpop.xlane.xlu1 %551 }
 0x241   :  { %v1052_v61 = vsub.f32 %v547_v40, %v552_v26 }
 0x243   :  { %v572_v62 = vadd.f32 %v1052_v61, %v64_v35  ;;  %v558_v31 = vmul.f32 1.442695, %v1052_v61 }
 0x245   :  { %v574_v63 = vsel %vm549_vm10, %v572_v62, -inf }
 0x246   :  { %575 = vmax.xlane.f32.xlu2 %v574_v63 }
 0x24b   :  { %v555_v0 = vpop.xlane.xlu0 %554 }
 0x24c   :  { %v1059_v16 = vsub.f32 %v548_v58, %v555_v0 }
 0x24e   :  { %v573_v25 = vadd.f32 %v1059_v16, %v65_v1  ;;  %v560_v15 = vmul.f32 1.442695, %v1059_v16 }
 0x250   :  { %v577_v2 = vsel %vm549_vm10, %v573_v25, -inf  ;;  %783 = vpow2.f32 %v560_v15 }
 0x251   :  { %578 = vmax.xlane.f32.xlu1 %v577_v2  ;;  %785 = vpow2.f32 %v558_v31 }
 0x256   :  { %v784_v18 = vpop.eup %783 }
 0x257   :  { %v565_v20 = vsel %vm549_vm10, %v784_v18, 0.0  ;;  %v786_v38 = vpop.eup %785 }
 0x258   :  { %v562_v42 = vsel %vm549_vm10, %v786_v38, 0.0 }
 0x2b9   :  { %v576_v3 = vpop.xlane.xlu2 %575 }
 0x2ba   :  { %vm580_vm12 = vcmp.ge.f32.partialorder %v572_v62, %v576_v3 }
 0x2bb   :  { %v582_v4 = vsel %vm580_vm12, %v1006_v10, 8 }
 0x2bc   :  { %v584_v5 = vsel %vm549_vm10, %v582_v4, 2147483647 }
 0x2bd   :  { %v586_v6 = vshra.s32 %v584_v5, 16  ;;  %v585_v21 = vand.u32 65535, %v584_v5 }
 0x2bf   :  { %v588_v7 = vcvt.s32.f32 %v586_v6  ;;  %v587_v23 = vcvt.s32.f32 %v585_v21 }
 0x2c1   :  { %589 = vmin.xlane.f32.xlu0 %v588_v7 }
 0x2c4   :  { %v579_v9 = vpop.xlane.xlu1 %578 }
 0x2c5   :  { %vm581_vm13 = vcmp.ge.f32.partialorder %v573_v25, %v579_v9 }
 0x2c6   :  { %v583_v11 = vsel %vm581_vm13, %v1006_v10, 8 }
 0x2c7   :  { %v599_v12 = vsel %vm549_vm10, %v583_v11, 2147483647 }
 0x2c8   :  { %v601_v13 = vshra.s32 %v599_v12, 16  ;;  %v600_v30 = vand.u32 65535, %v599_v12 }
 0x2ca   :  { %v603_v60 = vcvt.s32.f32 %v601_v13  ;;  %v602_v33 = vcvt.s32.f32 %v600_v30 }
 0x2cc   :  { %604 = vmin.xlane.f32.xlu2 %v603_v60 }
 0x2d4   :  { %631 = vmax.xlane.f32.xlu2 %v630_v17 }
 0x2dc   :  { %566 = vadd.xlane.f32.xlu2 %v565_v20 }
 0x334   :  { %v590_v22 = vpop.xlane.xlu0 %589 }
 0x335   :  { %vm591_vm14 = vcmp.eq.f32.partialorder %v588_v7, %v590_v22  ;;  %v596_v43 = vcvt.f32.s32 %v590_v22 }
 0x336   :  { %v592_v28 = vsel %vm591_vm14, %v587_v23, inf }
 0x337   :  { %593 = vmin.xlane.f32.xlu1 %v592_v28  ;;  %v597_v40 = vshll.u32 %v596_v43, 16 }
 0x33f   :  { %646 = vmax.xlane.f32.xlu1 %v645_v29  ;;  %v605_v32 = vpop.xlane.xlu2 %604 }
 0x340   :  { %vm606_vm15 = vcmp.eq.f32.partialorder %v603_v60, %v605_v32  ;;  %v611_v8 = vcvt.f32.s32 %v605_v32 }
 0x341   :  { %v607_v34 = vsel %vm606_vm15, %v602_v33, inf }
 0x342   :  { %608 = vmin.xlane.f32.xlu0 %v607_v34  ;;  %v612_v51 = vshll.u32 %v611_v8, 16 }
 0x347   :  { %v632_v39 = vpop.xlane.xlu2 %631 }
 0x348   :  { %vm633_vm0 = vcmp.eq.f32.partialorder %v630_v17, %v632_v39  ;;  %v638_v57 = vcvt.f32.s32 %v632_v39 }
 0x349   :  { %v634_v41 = vsel %vm633_vm0, %v629_v37, -inf }
 0x34a   :  { %635 = vmax.xlane.f32.xlu1 %v634_v41  ;;  %563 = vadd.xlane.f32.xlu0 %v562_v42  ;;  %v639_v35 = vshll.u32 %v638_v57, 16 }
 0x34f   :  { %v567_v25 = vpop.xlane.xlu2 %566 }
 0x3aa   :  { %v594_v44 = vpop.xlane.xlu1 %593 }
 0x3ab   :  { %v595_v45 = vcvt.f32.s32 %v594_v44 }
 0x3ad   :  { %v598_v47 = vadd.s32 %v597_v40, %v595_v45 }
 0x3af   :  { %vm614_vm1 = vcmp.eq.s32.totalorder %v1006_v10, %v598_v47 }
 0x3b0   :  { %v616_v19 = vsel %vm614_vm1, %v1052_v61, -inf }
 0x3b1   :  { %v618_v49 = vsel %vm549_vm10, %v616_v19, -inf }
 0x3b2   :  { %619 = vmax.xlane.f32.xlu2 %v618_v49  ;;  %v647_v50 = vpop.xlane.xlu1 %646 }
 0x3b3   :  { %vm648_vm2 = vcmp.eq.f32.partialorder %v645_v29, %v647_v50  ;;  %v653_v3 = vcvt.f32.s32 %v647_v50 }
 0x3b4   :  { %v649_v52 = vsel %vm648_vm2, %v644_v48, -inf }
 0x3b5   :  { %v609_v54 = vpop.xlane.xlu0 %608  ;;  %650 = vmax.xlane.f32.xlu0 %v649_v52  ;;  %v654_v9 = vshll.u32 %v653_v3, 16 }
 0x3b6   :  { %v610_v55 = vcvt.f32.s32 %v609_v54 }
 0x3b8   :  { %v613_v56 = vadd.s32 %v612_v51, %v610_v55 }
 0x3ba   :  { %vm615_vm3 = vcmp.eq.s32.totalorder %v1006_v10, %v613_v56 }
 0x3bb   :  { %v617_v58 = vsel %vm615_vm3, %v1059_v16, -inf }
 0x3bc   :  { %v621_v59 = vsel %vm549_vm10, %v617_v58, -inf }
 0x3bd   :  { %622 = vmax.xlane.f32.xlu1 %v621_v59  ;;  %v636_v26 = vpop.xlane.xlu1 %635  ;;  %v564_v1 = vpop.xlane.xlu0 %563 }
 0x3be   :  { %v637_v61 = vcvt.f32.s32 %v636_v26  ;;  %787 = vlog2.f32 %v564_v1 }
 0x3bf   :  { %789 = vlog2.f32 %v567_v25 }
 0x3c0   :  { %v640_v62 = vadd.s32 %v639_v35, %v637_v61 }
 0x3c2   :  { %vm656_vm5 = vcmp.gt.s32.totalorder %v640_v62, 0 }
 0x3c3   :  { %v658_v63 = vsel %vm656_vm5, %v598_v47, 7 }
 0x3c4   :  { %v665_v0 = vsel %vm660_vm4, %v658_v63, 0  ;;  %v788_v2 = vpop.eup %787 }
 0x3c5   :  { %667 = vst [vmem:[#allocation6] sm:$0xff] %v665_v0  ;;  %v569_v16 = vmul.f32 0.6931472, %v788_v2  ;;  %v790_v13 = vpop.eup %789 }
 0x3c6   :  { %v571_v60 = vmul.f32 0.6931472, %v790_v13 }
 0x425   :  { %v620_v4 = vpop.xlane.xlu2 %619 }
 0x426   :  { %v624_v5 = vsub.f32 %v620_v4, %v569_v16 }
 0x428   :  { %v661_v6 = vsel %vm660_vm4, %v624_v5, 0.0  ;;  %v651_v7 = vpop.xlane.xlu0 %650 }
 0x429   :  { %663 = vst [vmem:[#allocation5] sm:$0xff] %v661_v6  ;;  %v652_v11 = vcvt.f32.s32 %v651_v7 }
 0x42b   :  { %v655_v12 = vadd.s32 %v654_v9, %v652_v11 }
 0x42d   :  { %vm657_vm6 = vcmp.gt.s32.totalorder %v655_v12, 0 }
 0x42e   :  { %v659_v14 = vsel %vm657_vm6, %v613_v56, 7 }
 0x42f   :  { %v666_v53 = vsel %vm660_vm4, %v659_v14, 0 }
 0x430   :  { %668 = vst [vmem:[#allocation6 + $0x8] sm:$0xff] %v666_v53  ;;  %v623_v15 = vpop.xlane.xlu1 %622 }
 0x431   :  { %v625_v17 = vsub.f32 %v623_v15, %v571_v60  ;;  %694 = dma.vmem_to_hbm [thread:$0]  %s687_s19, 256, %s689_s22, [#allocation7], %s876_s28, %s876_s28, %s877_s7  }
 0x433   :  { %v662_v18 = vsel %vm660_vm4, %v625_v17, 0.0 }
 0x434   :  { %664 = vst [vmem:[#allocation5 + $0x8] sm:$0xff] %v662_v18 }
 0x435   :  { %681 = dma.vmem_to_hbm [thread:$0]  %s674_s24, 256, %s676_s27, [#allocation4], %s876_s28, %s876_s28, %s877_s7  }
 0x436   :  { %865 = dma.done.wait [#allocation4], 256  }
 0x437   :  { %866 = vsyncadd [#allocation4], 4294967040 }
 0x438   :  { %867 = dma.done.wait [#allocation7], 256  }
 0x439   :  { %868 = vsyncadd [#allocation7], 4294967040 }
 0x43a   :  { %703 = vsyncpa [#allocation3], 1 }
 0x43b   :  { %704 = vsyncpa [#allocation4], 1 }
 0x43c   :  { %705 = vsyncpa [#allocation7], 1 }

</bundles_post_ra>
